<compile_context>
chip_gen: v7x
topology: tpu7x:2x2x1
jax: 0.10.0
libtpu: 0.0.40
codegen_flags: <defaults>
</compile_context>

<pallas_src>
import jax
import jax.numpy as jnp
from jax.experimental import pallas as pl
from jax.experimental.pallas import tpu as pltpu


def _binary_conv_kernel(w_ref, p_ref, b_ref, o_ref):
    # Weight is already binarized + cast to bf16 in the wrapper (hoisted out of the
    # grid loop).  One lane-dense MXU matmul with f32 accumulation + bias add.
    acc = jnp.dot(w_ref[...], p_ref[...], preferred_element_type=jnp.float32)
    o_ref[...] = (acc + b_ref[...]).astype(o_ref.dtype)


def _round_up(v, m):
    return (v + m - 1) // m * m


def _vmem_capacity_bytes():
    try:
        return int(pltpu.get_tpu_info().vmem_capacity_bytes)
    except Exception:
        return 64 * 1024 * 1024  # conservative fallback: v7x per-TensorCore VMEM


def _pick_tm(tm_req, M, kdim_p, oc_p, vmem_budget):
    """Pick an M-tile: as large as requested, multiple of 128, within VMEM budget."""
    tm = min(_round_up(max(tm_req, 128), 128), _round_up(M, 128))

    def step_bytes(t):
        patch = 2 * kdim_p * t * 2      # double-buffered bf16 patch tile
        wgt = 2 * oc_p * kdim_p * 2     # binarized bf16 weight (resident, buffered)
        bias = 2 * oc_p * 1 * 4
        outb = 2 * oc_p * t * 4         # double-buffered f32 output tile
        return patch + wgt + bias + outb

    while tm > 128 and step_bytes(tm) > vmem_budget:
        tm -= 128
    return tm


def _im2col_t(x, K, stride, padding):
    """x: [N, C, H, W] -> transposed patch matrix P^T [C*K*K, N*OH*OW], plus (OH, OW).

    Row (contraction) order matches weight.reshape(OC, C*K*K): ic slowest, then kh, kw.
    Column order is (n, oh, ow) flattened.
    """
    N, C, H, W = x.shape
    xp = jnp.pad(x, ((0, 0), (0, 0), (padding, padding), (padding, padding)))
    Hp, Wp = H + 2 * padding, W + 2 * padding
    OH = (Hp - K) // stride + 1
    OW = (Wp - K) // stride + 1
    cols = []
    for kh in range(K):
        for kw in range(K):
            cols.append(
                xp[:, :, kh:kh + stride * OH:stride, kw:kw + stride * OW:stride]
            )  # [N, C, OH, OW]
    pat = jnp.stack(cols, axis=2)                      # [N, C, K*K, OH, OW]
    pat = pat.reshape(N, C * K * K, OH * OW)           # (ic, kh, kw) flattened
    pat = jnp.transpose(pat, (1, 0, 2)).reshape(C * K * K, N * OH * OW)
    return pat, OH, OW


def binary_conv2d(x, weight, bias, stride=1, padding=0, tm=512):
    """Forward of BinaryConv2d.

    x:      [N, IC, H, W]  float32 (NCHW, like PyTorch)
    weight: [OC, IC, K, K] float32 (raw weights; sign-binarized here, as in torch)
    bias:   [OC] float32 or None
    returns [N, OC, OH, OW] float32
    """
    N, IC, H, W = x.shape
    OC, IC2, K, _ = weight.shape
    assert IC == IC2

    patches_t, OH, OW = _im2col_t(x, K, stride, padding)       # [Kdim, M] f32
    Kdim, M = patches_t.shape

    # Hoisted binarization (torch.sign semantics, sign(0)=0); exact in bf16.
    w_bin = jnp.sign(weight).reshape(OC, Kdim).astype(jnp.bfloat16)
    b_vec = bias if bias is not None else jnp.zeros((OC,), jnp.float32)

    # Alignment padding: sublane multiples for OC / Kdim, tile multiple for M.
    OC_p = _round_up(OC, 8)
    Kdim_p = _round_up(Kdim, 8)
    vmem_cap = _vmem_capacity_bytes()
    tm = _pick_tm(tm, M, Kdim_p, OC_p, vmem_budget=vmem_cap // 3)
    Mpad = _round_up(M, tm)

    patches_t = jnp.pad(patches_t.astype(jnp.bfloat16),
                        ((0, Kdim_p - Kdim), (0, Mpad - M)))
    w_bin = jnp.pad(w_bin, ((0, OC_p - OC), (0, Kdim_p - Kdim)))
    b_col = jnp.pad(b_vec.astype(jnp.float32), (0, OC_p - OC)).reshape(OC_p, 1)

    cost = pl.CostEstimate(
        flops=2 * Mpad * Kdim_p * OC_p,
        transcendentals=0,
        bytes_accessed=(patches_t.size * 2 + w_bin.size * 2
                        + b_col.size * 4 + Mpad * OC_p * 4))

    out = pl.pallas_call(
        _binary_conv_kernel,
        out_shape=jax.ShapeDtypeStruct((OC_p, Mpad), jnp.float32),
        grid_spec=pltpu.PrefetchScalarGridSpec(
            num_scalar_prefetch=0,
            grid=(Mpad // tm,),
            in_specs=[
                pl.BlockSpec((OC_p, Kdim_p), lambda i: (0, 0)),  # weight (resident)
                pl.BlockSpec((Kdim_p, tm), lambda i: (0, i)),    # P^T tile
                pl.BlockSpec((OC_p, 1), lambda i: (0, 0)),       # bias column
            ],
            out_specs=pl.BlockSpec((OC_p, tm), lambda i: (0, i)),
        ),
        compiler_params=pltpu.CompilerParams(
            dimension_semantics=("parallel",),
            vmem_limit_bytes=int(vmem_cap * 3 // 4)),
        cost_estimate=cost,
    )(w_bin, patches_t, b_col)

    out = out[:OC, :M]                                    # [OC, N*OH*OW]
    # Cheap leading-dim permutation (contiguous OH*OW chunks move unchanged).
    out = out.reshape(OC, N, OH, OW).transpose(1, 0, 2, 3)
    return out


def _reference(x, weight, bias, stride, padding):
    # bf16-activation reference: matches the kernel's precision choice exactly
    # (sign(W) is exact in bf16; accumulation is f32 in both paths).
    bw = jnp.sign(weight).astype(jnp.bfloat16)
    y = jax.lax.conv_general_dilated(
        x.astype(jnp.bfloat16), bw,
        window_strides=(stride, stride),
        padding=((padding, padding), (padding, padding)),
        dimension_numbers=("NCHW", "OIHW", "NCHW"),
        preferred_element_type=jnp.float32)
    if bias is not None:
        y = y + bias.reshape(1, -1, 1, 1)
    return y


if __name__ == "__main__":
    key = jax.random.PRNGKey(0)
    kx, kw = jax.random.split(key)

    # Module config: BinaryConv2d(in_channels=4, out_channels=8, kernel_size=3,
    #                             stride=1, padding=1, bias=True)
    N, IC, H, W = 2, 4, 16, 16
    OC, K, stride, padding = 8, 3, 1, 1

    x = jax.random.normal(kx, (N, IC, H, W), dtype=jnp.float32)
    weight = jax.random.normal(kw, (OC, IC, K, K), dtype=jnp.float32) * 0.1
    bias = jnp.zeros((OC,), dtype=jnp.float32)

    y = binary_conv2d(x, weight, bias, stride=stride, padding=padding)
    y = jax.block_until_ready(y)

    y_ref = _reference(x, weight, bias, stride, padding)
    assert y.shape == (N, OC, H, W), y.shape
    assert jnp.allclose(y, y_ref, atol=2e-2, rtol=2e-2), "mismatch vs reference"

    print("KERNEL_OK")
</pallas_src>

<mosaic_0001>
module attributes {stable_mosaic.version = 11 : i64} {
  func.func @_binary_conv_kernel(%arg0: i32, %arg1: memref<8x40xbf16, #tpu.memory_space<vmem>>, %arg2: memref<40x512xbf16, #tpu.memory_space<vmem>>, %arg3: memref<8x1xf32, #tpu.memory_space<vmem>>, %arg4: memref<8x512xf32, #tpu.memory_space<vmem>>) attributes {dimension_semantics = [#tpu.dimension_semantics<parallel>], iteration_bounds = array<i64: 1>, scalar_prefetch = 0 : i64, scratch_operands = 0 : i64, tpu.core_type = #tpu.core_type<tc>, window_params = [{pipeline_mode = #tpu.pipeline_mode<synchronous>, transform_indices = @transform_0, window_bounds = array<i64: 8, 40>}, {transform_indices = @transform_1, window_bounds = array<i64: 40, 512>}, {pipeline_mode = #tpu.pipeline_mode<synchronous>, transform_indices = @transform_2, window_bounds = array<i64: 8, 1>}, {transform_indices = @transform_3, window_bounds = array<i64: 8, 512>}]} {
    %c0 = arith.constant 0 : index
    %c0_0 = arith.constant 0 : index
    %0 = vector.load %arg1[%c0, %c0_0] : memref<8x40xbf16, #tpu.memory_space<vmem>>, vector<8x40xbf16>
    %c0_1 = arith.constant 0 : index
    %c0_2 = arith.constant 0 : index
    %1 = vector.load %arg2[%c0_1, %c0_2] : memref<40x512xbf16, #tpu.memory_space<vmem>>, vector<40x512xbf16>
    %cst = arith.constant dense<0.000000e+00> : vector<8x512xf32>
    %2 = tpu.matmul %0, %1, %cst {dimension_numbers = #tpu.dot_dimension_numbers<[1], [0], [0], [1], [0, 0, 1, 1], [], []>} : vector<8x40xbf16>, vector<40x512xbf16>, vector<8x512xf32> -> vector<8x512xf32>
    %c0_3 = arith.constant 0 : index
    %c0_4 = arith.constant 0 : index
    %3 = vector.load %arg3[%c0_3, %c0_4] : memref<8x1xf32, #tpu.memory_space<vmem>>, vector<8x1xf32>
    %4 = vector.broadcast %3 : vector<8x1xf32> to vector<8x512xf32>
    %5 = arith.addf %2, %4 : vector<8x512xf32>
    %c0_5 = arith.constant 0 : index
    %c0_6 = arith.constant 0 : index
    %6 = vector.load %arg4[%c0_5, %c0_6] : memref<8x512xf32, #tpu.memory_space<vmem>>, vector<8x512xf32>
    tpu.vector_store %arg4[%c0_5, %c0_6], %5 {strides = array<i32>} : memref<8x512xf32, #tpu.memory_space<vmem>>, vector<8x512xf32>,
    return
  }
  func.func @transform_0(%arg0: i32) -> (i32, i32) {
    %c0_i32 = arith.constant 0 : i32
    %c0_i32_0 = arith.constant 0 : i32
    %c0_i32_1 = arith.constant 0 : i32
    return %c0_i32, %c0_i32_0 : i32, i32
  }
  func.func @transform_1(%arg0: i32) -> (i32, i32) {
    %c0_i32 = arith.constant 0 : i32
    %c0_i32_0 = arith.constant 0 : i32
    return %c0_i32, %arg0 : i32, i32
  }
  func.func @transform_2(%arg0: i32) -> (i32, i32) {
    %c0_i32 = arith.constant 0 : i32
    %c0_i32_0 = arith.constant 0 : i32
    %c0_i32_1 = arith.constant 0 : i32
    return %c0_i32, %c0_i32_0 : i32, i32
  }
  func.func @transform_3(%arg0: i32) -> (i32, i32) {
    %c0_i32 = arith.constant 0 : i32
    %c0_i32_0 = arith.constant 0 : i32
    return %c0_i32, %arg0 : i32, i32
  }
}

</mosaic_0001>

<bundles_post_ra>
// kernel: tpu_custom_call.1
= control target key start
LH: loop header
LB: loop body
LE: loop exit
PB: predicated region body
PF: predicated region fallthrough
CT: control target
= control target key end

     0   :  { %8 = vsyncpa [#allocation3], 0  ;;  %s356_s0 = inlined_call_operand.vmem [shape: bf16[8,40], index: 0, kind: input, shape index: {}]   ;;  %s357_s1 = inlined_call_operand.hbm [shape: bf16[40,512], index: 1, kind: input, shape index: {}]   ;;  %s358_s2 = inlined_call_operand.vmem [shape: f32[8,1], index: 2, kind: input, shape index: {}]   ;;  %s359_s3 = inlined_call_operand.hbm [shape: f32[8,512], index: 3, kind: output, shape index: {}]  }
   0x1   :  { %9 = vsyncpa [#allocation4], 0  ;;  %s301_s12 = smov [#allocation2]   ;;  %s253_s16 = scalar_lea.hbm %s357_s1, 1280 }
   0x2   :  { %s17_s13 = sshll.u32 %s301_s12, 4  ;;  %p254_p0 = scmp.ne.s32.totalorder %s357_s1, %s253_s16  ;;  %s18_s13 = int_to_ptr.vmem [resolvable:$true] %s17_s13 }
   0x3   :  { %p257_p1 = scmp.lt.u32.totalorder %s253_s16, %s357_s1 }
   0x5   :  { %p259_p2 = pnand %p257_p1, %p254_p0 }
   0x7   :  { %262 = shalt.err (!%p259_p2)
}
   0x8   :  { %s263_s21 = scalar_lea.vmem %s18_s13, 1280  ;;  %p268_p4 = scmp.lt.s32.totalorder %s18_s13, %s18_s13 }
   0x9   :  { %p264_p3 = scmp.ne.s32.totalorder %s18_s13, %s263_s21  ;;  %p269_p5 = scmp.lt.s32.totalorder %s263_s21, %s263_s21 }
   0xb   :  { %p270_p6 = por %p269_p5, %p268_p4 }
   0xd   :  { %p271_p7 = pnand %p270_p6, %p264_p3 }
   0xf   :  { %274 = shalt.err (!%p271_p7)
}
  0x10   :  { %s302_s22 = smov 256   ;;  %s303_s23 = smov 16  }
  0x11   :  { %23 = dma.hbm_to_vmem [thread:$0]  %s357_s1, 1280, %s18_s13, [#allocation3], %s302_s22, %s302_s22, %s303_s23  }
  0x12   :  { %297 = dma.done.wait [#allocation3], 1280  }
  0x13   :  { %298 = vsyncadd [#allocation3], 4294966016  ;;  %v304_v0 = vmov 0   ;;  %v237_v1 = vld [vmem:[#allocation2 + $0x4] ss:$16 sps:$4 sm:$0xff]   ;;  %vm101_vm0 = vcmask 1043456  }
  0x14   :  { %146 = vmatprep.mubr.bf16.mxu0 %v304_v0  ;;  %187 = vmatprep.mubr.bf16.mxu1 %v304_v0  ;;  %v239_v2 = vld [vmem:[#allocation2 + $0xc] ss:$16 sps:$4 sm:$0xff]   ;;  %v241_v3 = vld [vmem:[#allocation2] ss:$16 sps:$4 sm:$0xff]   ;;  %v242_v4 = vld [vmem:[#allocation2 + $0x8] ss:$16 sps:$4 sm:$0xff]  }
  0x15   :  { %236 = vset.pattern.permute.xlu0 %v304_v0  ;;  %114 = vmatprep.subr.bf16.mxu0 %v237_v1  ;;  %v243_v5 = vld [vmem:[#allocation2 + $0x24] ss:$16 sps:$4 sm:$0xff]   ;;  %v245_v6 = vld [vmem:[#allocation2 + $0x2c] ss:$16 sps:$4 sm:$0xff]   ;;  %v247_v7 = vld [vmem:[#allocation2 + $0x20] ss:$16 sps:$4 sm:$0xff]  }
  0x16   :  { %155 = vmatprep.subr.bf16.mxu1 %v239_v2  ;;  %115 = vmatpush1.bf16.msra.mxu0 %v241_v3  ;;  %v248_v8 = vld [vmem:[#allocation2 + $0x28] ss:$16 sps:$4 sm:$0xff]   ;;  %v39_v9 = vld [vmem:[#allocation2 + $0x40] sm:$0xff]  ;;  %vm97_vm1 = vcmask 326656   ;;  %s305_s29 = smov [#allocation5]  }
  0x17   :  { %156 = vmatpush1.bf16.msra.mxu1 %v242_v4  ;;  %116 = vmatprep.subr.bf16.mxu0 %v243_v5  ;;  %v40_v10 = vld [vmem:[#allocation2 + $0x48] sm:$0xff]  ;;  %v224_v11 = vcombine.high %v39_v9, %v39_v9  ;;  %v223_v13 = vcombine.low %v39_v9, %v39_v9  ;;  %v41_v15 = vld [vmem:[%s358_s2] sm:$0xff]  ;;  %s206_s30 = sshll.u32 %s305_s29, 4  ;;  %s207_s30 = int_to_ptr.vmem [resolvable:$true] %s206_s30 }
  0x18   :  { %157 = vmatprep.subr.bf16.mxu1 %v245_v6  ;;  %v226_v12 = vcombine.high %v40_v10, %v40_v10  ;;  %v225_v14 = vcombine.low %v40_v10, %v40_v10  ;;  %44 = vperm.xlu0 %236, %v41_v15   ;;  %v30_v18 = vld [vmem:[%s356_s0] sm:$0xf]  ;;  %s275_s0 = scalar_lea.vmem %s207_s30, 512  ;;  %p280_p9 = scmp.lt.s32.totalorder %s207_s30, %s207_s30 }
  0x19   :  { %v103_v16 = vsel %vm101_vm0, %v223_v13, 0  ;;  %p276_p8 = scmp.ne.s32.totalorder %s207_s30, %s275_s0  ;;  %p281_p10 = scmp.lt.s32.totalorder %s275_s0, %s275_s0 }
  0x1a   :  { %117 = vmatpush1.bf16.msra.mxu0 %v247_v7  ;;  %v109_v17 = vsel %vm101_vm0, %v225_v14, 0 }
  0x1b   :  { %158 = vmatpush1.bf16.msra.mxu1 %v248_v8  ;;  %227 = vmatprep.subr.msk.bf16.mxu0 %vm101_vm0, %v224_v11  ;;  %p282_p11 = por %p281_p10, %p280_p9 }
  0x1c   :  { %229 = vmatprep.subr.msk.bf16.mxu1 %vm101_vm0, %v226_v12 }
  0x1d   :  { %p283_p12 = pnand %p282_p11, %p276_p8 }
  0x1e   :  { %119 = vmatpush1.bf16.msra.mxu0 %v103_v16 }
  0x1f   :  { %160 = vmatpush1.bf16.msra.mxu1 %v109_v17 }
  0x21   :  { %228 = vmatmul.mubr.msk.bf16.vlgmr.msra.gmra.mrb[0].mxu0 %vm97_vm1, %v30_v18 }
  0x22   :  { %230 = vmatmul.mubr.msk.bf16.vlgmr.msra.gmra.mrb[0].mxu1 %vm97_vm1, %v30_v18 }
  0x97   :  { %v45_v19 = vpop.permute.xlu0 %44 }
  0xf4   :  { %v148_v20 = vpop.f32.mrb[0].mxu0 }
  0xf5   :  { %v189_v21 = vpop.f32.mrb[0].mxu1  ;;  %v149_v22 = vadd.f32 %v148_v20, %v45_v19  ;;  %v150_v24 = vpop.f32.mrb[1].mxu0 }
  0xf6   :  { %v190_v23 = vadd.f32 %v189_v21, %v45_v19  ;;  %v191_v25 = vpop.f32.mrb[1].mxu1  ;;  %v151_v26 = vadd.f32 %v150_v24, %v45_v19  ;;  %v152_v28 = vpop.f32.mrb[2].mxu0 }
  0xf7   :  { %v192_v27 = vadd.f32 %v191_v25, %v45_v19  ;;  %v193_v29 = vpop.f32.mrb[2].mxu1  ;;  %196 = vst [vmem:[#allocation5] sm:$0xff] %v149_v22  ;;  %v153_v30 = vpop.f32.mrb[3].mxu0 }
  0xf8   :  { %198 = vst [vmem:[#allocation5 + $0x10] sm:$0xff] %v190_v23  ;;  %v194_v31 = vpop.f32.mrb[3].mxu1  ;;  %197 = vst [vmem:[#allocation5 + $0x8] sm:$0xff] %v151_v26 }
  0xf9   :  { %199 = vst [vmem:[#allocation5 + $0x18] sm:$0xff] %v192_v27 }
  0xfa   :  { %286 = shalt.err (!%p283_p12)
}
  0xfb   :  { %s287_s5 = scalar_lea.hbm %s359_s3, 512 }
  0xfc   :  { %p288_p13 = scmp.ne.s32.totalorder %s359_s3, %s287_s5  ;;  %p291_p0 = scmp.lt.u32.totalorder %s287_s5, %s359_s3 }
  0xfe   :  { %p293_p1 = pnand %p291_p0, %p288_p13 }
 0x100   :  { %296 = shalt.err (!%p293_p1)
}
 0x101   :  { %209 = dma.vmem_to_hbm [thread:$0]  %s207_s30, 512, %s359_s3, [#allocation4]  }
 0x102   :  { %299 = dma.done.wait [#allocation4], 512  }
 0x103   :  { %300 = vsyncadd [#allocation4], 4294966784 }
 0x104   :  { %213 = vsyncpa [#allocation3], 1 }
 0x105   :  { %214 = vsyncpa [#allocation4], 1 }

</bundles_post_ra>
